<compile_context>
chip_gen: v5e
topology: v5e:2x2
jax: 0.10.0
libtpu: 0.0.40
codegen_flags: <defaults>
</compile_context>

<pallas_src>
import functools
import math

import jax
import jax.numpy as jnp
from jax.experimental import pallas as pl
from jax.experimental.pallas import tpu as pltpu


LANE = 128


def _round_up(x: int, m: int) -> int:
    return ((x + m - 1) // m) * m


def _physical_row_bytes(widths, itemsize: int) -> int:
    """Lane-padded VMEM bytes per row summed over the given block widths."""
    return sum(_round_up(w, LANE) for w in widths) * itemsize


def _lane_group(backcast_size: int, forecast_len: int, batch: int) -> int:
    """Smallest row-group G so G*backcast and G*forecast are 128-multiples.

    Falls back to G=1 (no repack) when the batch is too small to benefit or
    the required group would be unreasonably large; the ungrouped path is
    still correct (blocks use full-array last dims, which BlockSpec allows).
    """
    def need(n: int) -> int:
        return LANE // math.gcd(n, LANE)

    nb, nf = need(backcast_size), need(forecast_len)
    g = nb * nf // math.gcd(nb, nf)          # lcm
    if g > 64 or batch < g:
        return 1
    return g


def _choose_row_tile(bg: int, row_in: int, row_back: int, row_fore: int,
                     itemsize: int) -> int:
    """Grouped-row tile sized from physical (lane-padded) bytes.

    Targets ~4 MiB per buffer set (=> ~8 MiB double-buffered), keeps the
    sublane dim a multiple of 8 (or the full extent), and guarantees >= 2
    grid steps when the grouped batch allows it (v7x megacore sharding)."""
    row_bytes = _physical_row_bytes((row_in, row_back, row_fore), itemsize)
    target_per_buffer_set = 4 * 1024 * 1024
    tb = max(1, target_per_buffer_set // row_bytes)
    if bg <= 8:
        return bg                            # single full-extent block
    tb = min(tb, bg)
    if bg >= 16:
        tb = min(tb, bg // 2)                # >= 2 steps for two TensorCores
    tb = max(8, (tb // 8) * 8)               # sublane-aligned rows
    return tb


def _identity_basis_kernel(group, backcast_size, forecast_len,
                           theta_ref, back_ref, fore_ref):
    """Split a (tb, group*D) tile into (tb, group*backcast) and (tb, group*forecast).

    Static lane-slice copies per group; the lane-relayout work is VPU/store
    traffic that overlaps the HBM DMA stream (kernel is memory-bound)."""
    d = backcast_size + forecast_len
    for g in range(group):                   # static, fully unrolled (group <= 64)
        base = g * d
        back_ref[:, g * backcast_size:(g + 1) * backcast_size] = (
            theta_ref[:, base:base + backcast_size])
        fore_ref[:, g * forecast_len:(g + 1) * forecast_len] = (
            theta_ref[:, base + backcast_size:base + d])


def identity_basis_forward(theta, backcast_size: int, out_features: int = 1):
    """Pallas implementation of IdentityBasis.forward.

    theta: [B, backcast_size + forecast_len]
    Returns (backcast [B, backcast_size],
             forecast [B, forecast_len // out_features, out_features]).
    """
    B, D = theta.shape
    forecast_len = D - backcast_size
    assert forecast_len > 0 and forecast_len % out_features == 0
    itemsize = jnp.dtype(theta.dtype).itemsize

    # --- lane-dense row grouping (metadata-only when B % g == 0) -------------
    g = _lane_group(backcast_size, forecast_len, B)
    b_pad = _round_up(B, g)
    theta_p = theta if b_pad == B else jnp.pad(theta, ((0, b_pad - B), (0, 0)))
    bg = b_pad // g
    row_in = g * D
    row_back = g * backcast_size
    row_fore = g * forecast_len
    theta_g = theta_p.reshape(bg, row_in)        # row-major => pure metadata

    # --- tiling / VMEM budget from physical bytes ----------------------------
    tb = _choose_row_tile(bg, row_in, row_back, row_fore, itemsize)
    grid = (pl.cdiv(bg, tb),)                    # ragged boundary masked by Pallas
    row_bytes = _physical_row_bytes((row_in, row_back, row_fore), itemsize)
    need = 2 * tb * row_bytes                    # double-buffered in + both outs
    vmem_limit = int(min(max(3 * need // 2 + (2 << 20), 8 << 20), 32 << 20))

    kernel = functools.partial(_identity_basis_kernel, g, backcast_size,
                               forecast_len)
    back_g, fore_g = pl.pallas_call(
        kernel,
        grid=grid,
        in_specs=[pl.BlockSpec((tb, row_in), lambda i: (i, 0))],
        out_specs=(
            pl.BlockSpec((tb, row_back), lambda i: (i, 0)),
            pl.BlockSpec((tb, row_fore), lambda i: (i, 0)),
        ),
        out_shape=(
            jax.ShapeDtypeStruct((bg, row_back), theta.dtype),
            jax.ShapeDtypeStruct((bg, row_fore), theta.dtype),
        ),
        compiler_params=pltpu.CompilerParams(
            dimension_semantics=("parallel",),
            vmem_limit_bytes=vmem_limit,
        ),
        cost_estimate=pl.CostEstimate(
            flops=0,
            transcendentals=0,
            bytes_accessed=int(2 * b_pad * D * itemsize),
        ),
    )(theta_g)

    # --- ungroup (metadata-only) and drop any remainder padding --------------
    backcast = back_g.reshape(b_pad, backcast_size)
    forecast_flat = fore_g.reshape(b_pad, forecast_len)
    if b_pad != B:
        backcast = backcast[:B]
        forecast_flat = forecast_flat[:B]
    forecast = forecast_flat.reshape(B, forecast_len // out_features, out_features)
    return backcast, forecast


if __name__ == "__main__":
    # Module hyper-params (deterministic, set in-script).
    backcast_size = 16
    forecast_horizon = 8
    out_features = 1
    forecast_len = forecast_horizon * out_features
    D = backcast_size + forecast_len

    def _check(batch, key):
        theta = jax.random.normal(key, (batch, D), dtype=jnp.float32)
        back, fore = identity_basis_forward(theta, backcast_size, out_features)
        jax.block_until_ready((back, fore))
        ref_back = theta[:, :backcast_size]
        ref_fore = theta[:, backcast_size:].reshape(batch, -1, out_features)
        assert back.shape == (batch, backcast_size)
        assert fore.shape == (batch, forecast_len // out_features, out_features)
        assert jnp.array_equal(back, ref_back)
        assert jnp.array_equal(fore, ref_fore)

    key = jax.random.PRNGKey(0)
    k_small, k_big = jax.random.split(key)
    # Tiny, spec-consistent shape (B=2): ungrouped full-block path.
    _check(2, k_small)
    # Larger batch: exercises the lane-dense grouped path, multi-step grid,
    # ragged boundary block and remainder-row padding.
    _check(1000, k_big)

    print("KERNEL_OK")
</pallas_src>

<mosaic_0001>
module attributes {stable_mosaic.version = 11 : i64} {
  func.func @_identity_basis_kernel(%arg0: i32, %arg1: memref<2x24xf32, #tpu.memory_space<vmem>>, %arg2: memref<2x16xf32, #tpu.memory_space<vmem>>, %arg3: memref<2x8xf32, #tpu.memory_space<vmem>>) attributes {dimension_semantics = [#tpu.dimension_semantics<parallel>], iteration_bounds = array<i64: 1>, scalar_prefetch = 0 : i64, scratch_operands = 0 : i64, tpu.core_type = #tpu.core_type<tc>, window_params = [{transform_indices = @transform_0, window_bounds = array<i64: 2, 24>}, {transform_indices = @transform_1, window_bounds = array<i64: 2, 16>}, {transform_indices = @transform_2, window_bounds = array<i64: 2, 8>}]} {
    %c0 = arith.constant 0 : index
    %c0_0 = arith.constant 0 : index
    %0 = vector.load %arg1[%c0, %c0_0] : memref<2x24xf32, #tpu.memory_space<vmem>>, vector<2x16xf32>
    %c0_1 = arith.constant 0 : index
    %c0_2 = arith.constant 0 : index
    %1 = vector.load %arg2[%c0_1, %c0_2] : memref<2x16xf32, #tpu.memory_space<vmem>>, vector<2x16xf32>
    tpu.vector_store %arg2[%c0_1, %c0_2], %0 {strides = array<i32>} : memref<2x16xf32, #tpu.memory_space<vmem>>, vector<2x16xf32>,
    %c0_3 = arith.constant 0 : index
    %c16 = arith.constant 16 : index
    %2 = vector.load %arg1[%c0_3, %c16] : memref<2x24xf32, #tpu.memory_space<vmem>>, vector<2x8xf32>
    %c0_4 = arith.constant 0 : index
    %c0_5 = arith.constant 0 : index
    %3 = vector.load %arg3[%c0_4, %c0_5] : memref<2x8xf32, #tpu.memory_space<vmem>>, vector<2x8xf32>
    tpu.vector_store %arg3[%c0_4, %c0_5], %2 {strides = array<i32>} : memref<2x8xf32, #tpu.memory_space<vmem>>, vector<2x8xf32>,
    return
  }
  func.func @transform_0(%arg0: i32) -> (i32, i32) {
    %c0_i32 = arith.constant 0 : i32
    %c0_i32_0 = arith.constant 0 : i32
    return %arg0, %c0_i32 : i32, i32
  }
  func.func @transform_1(%arg0: i32) -> (i32, i32) {
    %c0_i32 = arith.constant 0 : i32
    %c0_i32_0 = arith.constant 0 : i32
    return %arg0, %c0_i32 : i32, i32
  }
  func.func @transform_2(%arg0: i32) -> (i32, i32) {
    %c0_i32 = arith.constant 0 : i32
    %c0_i32_0 = arith.constant 0 : i32
    return %arg0, %c0_i32 : i32, i32
  }
}

</mosaic_0001>

<bundles_post_ra>
// kernel: tpu_custom_call.1
= control target key start
LH: loop header
LB: loop body
LE: loop exit
PB: predicated region body
PF: predicated region fallthrough
CT: control target
= control target key end

     0   :  { %8 = vsyncpa [#allocation3], 0  ;;  %s179_s0 = inlined_call_operand.hbm [shape: f32[2,24], index: 0, kind: input, shape index: {}]   ;;  %s180_s1 = inlined_call_operand.hbm [shape: f32[2,16], index: 1, kind: output, shape index: {0}]   ;;  %s181_s2 = inlined_call_operand.hbm [shape: f32[2,8], index: 2, kind: output, shape index: {1}]  }
   0x1   :  { %9 = vsyncpa [#allocation4], 0 }
   0x2   :  { %10 = vsyncpa [#allocation7], 0  ;;  %s16_s11 = sshll.u32 %s179_s0, 4  ;;  %s151_s12 = smov [#allocation2]   ;;  %s17_s11 = int_to_ptr.hbm [resolvable:$true] %s16_s11 }
   0x3   :  { %s18_s13 = sshll.u32 %s151_s12, 4  ;;  %s19_s13 = int_to_ptr.vmem [resolvable:$true] %s18_s13 }
   0x4   :  { %21 = dma.hbm_to_vmem [thread:$0]  %s17_s11, 32, %s19_s13, [#allocation3]  }
   0x5   :  { %145 = dma.done.wait [#allocation3], 32  }
   0x6   :  { %146 = vsyncadd [#allocation3], 4294967264  ;;  %v29_v0 = vld [vmem:[#allocation2] sm:$0x3]  ;;  %s152_s14 = smov 112   ;;  %s153_s15 = smov [#allocation5]  }
   0x7   :  { %31 = vrot.lane.b32.xlu0 %v29_v0, %s152_s14  ;;  %s41_s16 = sshll.u32 %s153_s15, 4  ;;  %s43_s19 = sshll.u32 %s180_s1, 4  ;;  %v26_v1 = vld [vmem:[#allocation2] sm:$0x3]  ;;  %vm27_vm0 = vcmask 123904   ;;  %vm34_vm1 = vcmask 58368   ;;  %s42_s16 = int_to_ptr.vmem [resolvable:$true] %s41_s16  ;;  %s44_s19 = int_to_ptr.hbm [resolvable:$true] %s43_s19 }
   0x8   :  { %28 = vst.msk [vmem:[#allocation5] sm:$0x3] %vm27_vm0, %v26_v1  ;;  %s154_s0 = smov [#allocation6]   ;;  %s54_s23 = sshll.u32 %s181_s2, 4  ;;  %s55_s23 = int_to_ptr.hbm [resolvable:$true] %s54_s23 }
   0x9   :  { %46 = dma.vmem_to_hbm [thread:$0]  %s42_s16, 32, %s44_s19, [#allocation4]  }
   0xa   :  { %s52_s20 = sshll.u32 %s154_s0, 4  ;;  %s53_s20 = int_to_ptr.vmem [resolvable:$true] %s52_s20 }
  0x79   :  { %v32_v2 = vpop.permute.xlu0 %31 }
  0x7a   :  { %35 = vst.msk [vmem:[#allocation6] sm:$0x3] %vm34_vm1, %v32_v2 }
  0x7b   :  { %57 = dma.vmem_to_hbm [thread:$0]  %s53_s20, 32, %s55_s23, [#allocation7]  }
  0x7c   :  { %147 = dma.done.wait [#allocation4], 32  }
  0x7d   :  { %148 = vsyncadd [#allocation4], 4294967264 }
  0x7e   :  { %149 = dma.done.wait [#allocation7], 32  }
  0x7f   :  { %150 = vsyncadd [#allocation7], 4294967264 }
  0x80   :  { %66 = vsyncpa [#allocation3], 1 }
  0x81   :  { %67 = vsyncpa [#allocation4], 1 }
  0x82   :  { %68 = vsyncpa [#allocation7], 1 }

</bundles_post_ra>
